<compile_context>
chip_gen: v7x
topology: tpu7x:2x2x1
jax: 0.10.0
libtpu: 0.0.40
codegen_flags: <defaults>
</compile_context>

<pallas_src>
import functools

import jax
import jax.numpy as jnp
from jax.experimental import pallas as pl
from jax.experimental.pallas import tpu as pltpu


def _self_attention_kernel(xq_ref, xk_hbm_ref, at_ref, kb_ref, wvt_ref, bv_ref,
                           gamma_ref, o_ref, xk_vmem, dma_sem, *, n_valid):
    f32 = jnp.float32
    bf16 = jnp.bfloat16

    b = pl.program_id(0)
    qi = pl.program_id(1)

    # Cache this batch element's keys/values (already bf16) once; reused by all
    # query tiles.  Legal because the qi grid axis is "arbitrary" (sequential).
    @pl.when(qi == 0)
    def _():
        cp = pltpu.make_async_copy(xk_hbm_ref.at[b], xk_vmem, dma_sem)
        cp.start()
        cp.wait()

    xq = xq_ref[0]                               # (C, tq) f32 -- query tile of x
    xq_b = xq.astype(bf16)
    xk_b = xk_vmem[...]                          # (C, Np) bf16 -- cached keys
    at_b = at_ref[...]                           # (C, C) bf16 = (Wq Wk^T)^T
    wvt_b = wvt_ref[...]                         # (C, C) bf16 = Wv^T
    kb = kb_ref[...]                             # (C, 1) f32, folded Wk bq^T
    bv = bv_ref[...]                             # (C, 1) f32

    # qa[c', i] = sum_c A[c, c'] xq[c, i] + kb[c']   (key-side bias folded in;
    # query-side bias terms are constant along the softmax axis and cancel).
    qa = jnp.dot(at_b, xq_b, preferred_element_type=f32) + kb         # (C, tq)

    # Scores in (keys, queries) orientation: s[j, i] = xk[:, j] . qa[:, i].
    dn0 = (((0,), (0,)), ((), ()))               # contract dim 0 of both operands
    s = jax.lax.dot_general(xk_b, qa.astype(bf16), dn0,
                            preferred_element_type=f32)               # (Np, tq)

    if n_valid < s.shape[0]:                     # static branch: mask padded keys
        key_idx = jax.lax.broadcasted_iota(jnp.int32, s.shape, 0)
        s = jnp.where(key_idx < n_valid, s, jnp.float32(-1e30))

    # Stable softmax over the key axis; normalization deferred past the matmuls.
    m = jnp.max(s, axis=0, keepdims=True)                              # (1, tq)
    e = jnp.exp(s - m)                                                 # (Np, tq) f32
    denom = jnp.sum(e, axis=0, keepdims=True)                          # (1, tq)

    # o[c', i] = sum_c Wv[c, c'] * (sum_j xk[c, j] e[j, i]) / denom + bv[c']
    xe = jnp.dot(xk_b, e.astype(bf16), preferred_element_type=f32)     # (C, tq), K=Np
    o = jnp.dot(wvt_b, xe.astype(bf16), preferred_element_type=f32)    # (C, tq), K=C
    o = o * pl.reciprocal(denom, approx=True) + bv                     # bv*denom cancels

    # Residual + learned scale, all f32.
    o_ref[0] = gamma_ref[0] * o + xq


def _round_up(x, m):
    return ((x + m - 1) // m) * m


def _pick_tq(C, n_pad, vmem_limit):
    """Largest lane-aligned query tile whose resident blocks + softmax temporaries fit."""
    weights = 2 * (2 * C * C * 2 + 2 * C * 4)          # double-buffered weight blocks
    keys = C * n_pad * 2                               # single-buffered bf16 key cache
    for tq in (512, 256, 128):
        if n_pad % tq:
            continue
        tiles = 2 * 2 * C * tq * 4                     # xq + out blocks, double-buffered
        temps = 2 * n_pad * tq * 4 + 4 * C * tq * 4    # s, e (f32) + small (C, tq) temps
        if weights + keys + tiles + temps <= vmem_limit // 2:
            return tq
    return 128


def self_attention_pallas(x_nchw, wq, bq, wk, bk, wv, bv, gamma, *, tq=None):
    """x_nchw: (B, C, W, H) f32.  1x1-conv weights channels-last: wq/wk (C, C//8),
    wv (C, C), bq/bk (1, C//8), bv (1, C), gamma (1,).  (bk cancels under softmax.)"""
    B, C, W, H = x_nchw.shape
    N = W * H
    n_pad = _round_up(N, 128)                          # lane-dense keys / scores / output

    # Channels-first, spatial flattened -- pure reshape, no HBM transpose.
    x = x_nchw.reshape(B, C, N).astype(jnp.float32)
    if n_pad != N:
        x = jnp.pad(x, ((0, 0), (0, 0), (0, n_pad - N)))
    x_keys = x.astype(jnp.bfloat16)                    # bf16 key/value feed (half HBM/VMEM)

    # Fold the q/k projections (terms constant along the softmax axis cancel):
    #   scores[i, j] = x_i^T (Wq Wk^T) x_j + (Wk bq^T) . x_j
    at_fold = (wk @ wq.T).astype(jnp.bfloat16)                 # (C, C) = (Wq Wk^T)^T
    kb_fold = (wk @ bq.reshape(-1, 1)).astype(jnp.float32)     # (C, 1)
    wvt = wv.T.astype(jnp.bfloat16)                            # (C, C) = Wv^T
    bv_col = bv.reshape(-1, 1).astype(jnp.float32)             # (C, 1)
    gamma = gamma.reshape(-1).astype(jnp.float32)              # (1,)

    # Explicit VMEM budget (generation-aware when the query is available).
    try:
        vmem_limit = min(int(pltpu.get_tpu_info().vmem_capacity_bytes * 0.7),
                         100 * 1024 * 1024)
    except Exception:
        vmem_limit = 48 * 1024 * 1024

    if tq is None:
        tq = _pick_tq(C, n_pad, vmem_limit)
    assert n_pad % tq == 0 and tq % 128 == 0

    kernel = functools.partial(_self_attention_kernel, n_valid=N)

    out = pl.pallas_call(
        kernel,
        out_shape=jax.ShapeDtypeStruct((B, C, n_pad), jnp.float32),
        grid_spec=pltpu.PrefetchScalarGridSpec(
            num_scalar_prefetch=0,
            grid=(B, n_pad // tq),
            in_specs=[
                pl.BlockSpec((1, C, tq), lambda b, qi: (b, 0, qi)),  # x, query tile (f32)
                pl.BlockSpec(memory_space=pl.ANY),                   # x, keys (bf16, HBM)
                pl.BlockSpec((C, C), lambda b, qi: (0, 0)),          # (Wq Wk^T)^T
                pl.BlockSpec((C, 1), lambda b, qi: (0, 0)),          # folded Wk bq^T
                pl.BlockSpec((C, C), lambda b, qi: (0, 0)),          # Wv^T
                pl.BlockSpec((C, 1), lambda b, qi: (0, 0)),          # bv
                pl.BlockSpec(memory_space=pltpu.MemorySpace.SMEM),   # gamma scalar
            ],
            out_specs=pl.BlockSpec((1, C, tq), lambda b, qi: (b, 0, qi)),
            scratch_shapes=[
                pltpu.VMEM((C, n_pad), jnp.bfloat16),   # per-batch key cache (single buf)
                pltpu.SemaphoreType.DMA,                # key-cache DMA completion
            ],
        ),
        compiler_params=pltpu.CompilerParams(
            dimension_semantics=("parallel", "arbitrary"),
            vmem_limit_bytes=vmem_limit),
    )(x, x_keys, at_fold, kb_fold, wvt, bv_col, gamma)

    if n_pad != N:
        out = out[:, :, :N]
    return out.reshape(B, C, W, H)


def _reference(x_nchw, wq, bq, wk, bk, wv, bv, gamma):
    """Plain-JAX f32 re-statement of the PyTorch forward, for verification."""
    B, C, W, H = x_nchw.shape
    N = W * H
    x = jnp.transpose(x_nchw.reshape(B, C, N), (0, 2, 1))     # (B, N, C)
    q = x @ wq + bq
    k = x @ wk + bk
    v = x @ wv + bv
    scores = jnp.einsum("bic,bjc->bij", q, k)
    attn = jax.nn.softmax(scores, axis=-1)
    out = jnp.einsum("bij,bjc->bic", attn, v)
    out = gamma[0] * out + x
    return jnp.transpose(out, (0, 2, 1)).reshape(B, C, W, H)


if __name__ == "__main__":
    def _run_case(key, B, C, W, H, tq=None):
        Cq = C // 8
        kx, k1, k2, k3, k4, k5, k6 = jax.random.split(key, 7)
        x = jax.random.normal(kx, (B, C, W, H), dtype=jnp.float32)
        scale = 1.0 / jnp.sqrt(jnp.float32(C))
        wq = jax.random.normal(k1, (C, Cq), dtype=jnp.float32) * scale
        bq = jax.random.normal(k2, (1, Cq), dtype=jnp.float32) * 0.01
        wk = jax.random.normal(k3, (C, Cq), dtype=jnp.float32) * scale
        bk = jax.random.normal(k4, (1, Cq), dtype=jnp.float32) * 0.01
        wv = jax.random.normal(k5, (C, C), dtype=jnp.float32) * scale
        bv = jax.random.normal(k6, (1, C), dtype=jnp.float32) * 0.01
        # PyTorch initializes gamma to 0 (output == input); nonzero here so the
        # attention path is actually exercised.
        gamma = jnp.array([0.5], dtype=jnp.float32)

        y = self_attention_pallas(x, wq, bq, wk, bk, wv, bv, gamma, tq=tq)
        y = jax.block_until_ready(y)
        y_ref = _reference(x, wq, bq, wk, bk, wv, bv, gamma)
        assert y.shape == (B, C, W, H)
        # bf16 MXU operands + approx reciprocal -> loosened tolerance vs f32 ref.
        assert jnp.allclose(y, y_ref, atol=5e-2, rtol=5e-2), "mismatch vs reference"

    key = jax.random.PRNGKey(0)
    k_a, k_b = jax.random.split(key)
    # Multi query-tile case: N = 256, tq = 128 -> exercises the per-batch key
    # cache being reused across qi tiles.
    _run_case(k_a, B=2, C=32, W=16, H=16, tq=128)
    # Ragged-N case: N = 100 padded to 128 with masked (-inf) keys.
    _run_case(k_b, B=2, C=32, W=10, H=10)

    print("KERNEL_OK")
</pallas_src>

<mosaic_0001>
module attributes {stable_mosaic.version = 11 : i64} {
  func.func @_self_attention_kernel(%arg0: i32, %arg1: i32, %arg2: memref<1x32x128xf32, #tpu.memory_space<vmem>>, %arg3: memref<2x32x256xbf16, #tpu.memory_space<any>>, %arg4: memref<32x32xbf16, #tpu.memory_space<vmem>>, %arg5: memref<32x1xf32, #tpu.memory_space<vmem>>, %arg6: memref<32x32xbf16, #tpu.memory_space<vmem>>, %arg7: memref<32x1xf32, #tpu.memory_space<vmem>>, %arg8: memref<1xf32, #tpu.memory_space<smem>>, %arg9: memref<1x32x128xf32, #tpu.memory_space<vmem>>, %arg10: memref<32x256xbf16, #tpu.memory_space<vmem>>, %arg11: memref<!tpu.dma_semaphore, #tpu.memory_space<semaphore_mem>>) attributes {dimension_semantics = [#tpu.dimension_semantics<parallel>, #tpu.dimension_semantics<arbitrary>], iteration_bounds = array<i64: 2, 2>, scalar_prefetch = 0 : i64, scratch_operands = 2 : i64, tpu.core_type = #tpu.core_type<tc>, window_params = [{transform_indices = @transform_0, window_bounds = array<i64: 1, 32, 128>}, {}, {pipeline_mode = #tpu.pipeline_mode<synchronous>, transform_indices = @transform_2, window_bounds = array<i64: 32, 32>}, {pipeline_mode = #tpu.pipeline_mode<synchronous>, transform_indices = @transform_3, window_bounds = array<i64: 32, 1>}, {pipeline_mode = #tpu.pipeline_mode<synchronous>, transform_indices = @transform_4, window_bounds = array<i64: 32, 32>}, {pipeline_mode = #tpu.pipeline_mode<synchronous>, transform_indices = @transform_5, window_bounds = array<i64: 32, 1>}, {transform_indices = @transform_6, window_bounds = array<i64: 1>}, {transform_indices = @transform_7, window_bounds = array<i64: 1, 32, 128>}]} {
    %c0_i32 = arith.constant 0 : i32
    %0 = arith.cmpi eq, %arg1, %c0_i32 : i32
    %1 = arith.extui %0 : i1 to i32
    %c0_i32_0 = arith.constant 0 : i32
    %2 = arith.cmpi ne, %1, %c0_i32_0 : i32
    scf.if %2 {
      %c0_i32_22 = arith.constant 0 : i32
      %c0_i32_23 = arith.constant 0 : i32
      %39 = tpu.memref_slice %arg3[%arg0, %c0_i32_22, %c0_i32_23] : memref<2x32x256xbf16, #tpu.memory_space<any>> -> memref<1x32x256xbf16, #tpu.memory_space<any>>
      %40 = tpu.memref_squeeze %39 : memref<1x32x256xbf16, #tpu.memory_space<any>> -> memref<32x256xbf16, #tpu.memory_space<any>>
      tpu.enqueue_dma source(%40 : memref<32x256xbf16, #tpu.memory_space<any>>) target(%arg10 : memref<32x256xbf16, #tpu.memory_space<vmem>>) target_semaphore(%arg11 : memref<!tpu.dma_semaphore, #tpu.memory_space<semaphore_mem>>)
      %c0_i32_24 = arith.constant 0 : i32
      %c0_i32_25 = arith.constant 0 : i32
      %41 = tpu.memref_slice %arg3[%arg0, %c0_i32_24, %c0_i32_25] : memref<2x32x256xbf16, #tpu.memory_space<any>> -> memref<1x32x256xbf16, #tpu.memory_space<any>>
      %42 = tpu.memref_squeeze %41 : memref<1x32x256xbf16, #tpu.memory_space<any>> -> memref<32x256xbf16, #tpu.memory_space<any>>
      tpu.wait_dma2 semaphore(%arg11 : memref<!tpu.dma_semaphore, #tpu.memory_space<semaphore_mem>>) src(%42 : memref<32x256xbf16, #tpu.memory_space<any>>) dst(%arg10 : memref<32x256xbf16, #tpu.memory_space<vmem>>)
    } else {
    }
    %c0 = arith.constant 0 : index
    %c0_1 = arith.constant 0 : index
    %c0_2 = arith.constant 0 : index
    %3 = vector.load %arg2[%c0, %c0_1, %c0_2] : memref<1x32x128xf32, #tpu.memory_space<vmem>>, vector<1x32x128xf32>
    %4 = vector.shape_cast %3 : vector<1x32x128xf32> to vector<32x128xf32>
    %5 = arith.truncf %4 : vector<32x128xf32> to vector<32x128xbf16>
    %c0_3 = arith.constant 0 : index
    %c0_4 = arith.constant 0 : index
    %6 = vector.load %arg10[%c0_3, %c0_4] : memref<32x256xbf16, #tpu.memory_space<vmem>>, vector<32x256xbf16>
    %c0_5 = arith.constant 0 : index
    %c0_6 = arith.constant 0 : index
    %7 = vector.load %arg4[%c0_5, %c0_6] : memref<32x32xbf16, #tpu.memory_space<vmem>>, vector<32x32xbf16>
    %c0_7 = arith.constant 0 : index
    %c0_8 = arith.constant 0 : index
    %8 = vector.load %arg6[%c0_7, %c0_8] : memref<32x32xbf16, #tpu.memory_space<vmem>>, vector<32x32xbf16>
    %c0_9 = arith.constant 0 : index
    %c0_10 = arith.constant 0 : index
    %9 = vector.load %arg5[%c0_9, %c0_10] : memref<32x1xf32, #tpu.memory_space<vmem>>, vector<32x1xf32>
    %c0_11 = arith.constant 0 : index
    %c0_12 = arith.constant 0 : index
    %10 = vector.load %arg7[%c0_11, %c0_12] : memref<32x1xf32, #tpu.memory_space<vmem>>, vector<32x1xf32>
    %cst = arith.constant dense<0.000000e+00> : vector<32x128xf32>
    %11 = tpu.matmul %7, %5, %cst {dimension_numbers = #tpu.dot_dimension_numbers<[1], [0], [0], [1], [0, 0, 1, 1], [], []>} : vector<32x32xbf16>, vector<32x128xbf16>, vector<32x128xf32> -> vector<32x128xf32>
    %12 = vector.broadcast %9 : vector<32x1xf32> to vector<32x128xf32>
    %13 = arith.addf %11, %12 : vector<32x128xf32>
    %14 = arith.truncf %13 : vector<32x128xf32> to vector<32x128xbf16>
    %cst_13 = arith.constant dense<0.000000e+00> : vector<256x128xf32>
    %15 = tpu.matmul %6, %14, %cst_13 {dimension_numbers = #tpu.dot_dimension_numbers<[0], [0], [1], [1], [0, 1, 1, 1], [], []>} : vector<32x256xbf16>, vector<32x128xbf16>, vector<256x128xf32> -> vector<256x128xf32>
    %cst_14 = arith.constant dense<0xFF800000> : vector<128xf32>
    %16 = vector.multi_reduction <maximumf>, %15, %cst_14 [0] : vector<256x128xf32> to vector<128xf32>
    %17 = vector.shape_cast %16 : vector<128xf32> to vector<1x128xf32>
    %18 = vector.broadcast %17 : vector<1x128xf32> to vector<256x128xf32>
    %19 = arith.subf %15, %18 : vector<256x128xf32>
    %20 = math.exp %19 : vector<256x128xf32>
    %cst_15 = arith.constant dense<0.000000e+00> : vector<128xf32>
    %21 = vector.multi_reduction <add>, %20, %cst_15 [0] : vector<256x128xf32> to vector<128xf32>
    %22 = vector.shape_cast %21 : vector<128xf32> to vector<1x128xf32>
    %23 = arith.truncf %20 : vector<256x128xf32> to vector<256x128xbf16>
    %cst_16 = arith.constant dense<0.000000e+00> : vector<32x128xf32>
    %24 = tpu.matmul %6, %23, %cst_16 {dimension_numbers = #tpu.dot_dimension_numbers<[1], [0], [0], [1], [0, 0, 1, 1], [], []>} : vector<32x256xbf16>, vector<256x128xbf16>, vector<32x128xf32> -> vector<32x128xf32>
    %25 = arith.truncf %24 : vector<32x128xf32> to vector<32x128xbf16>
    %cst_17 = arith.constant dense<0.000000e+00> : vector<32x128xf32>
    %26 = tpu.matmul %8, %25, %cst_17 {dimension_numbers = #tpu.dot_dimension_numbers<[1], [0], [0], [1], [0, 0, 1, 1], [], []>} : vector<32x32xbf16>, vector<32x128xbf16>, vector<32x128xf32> -> vector<32x128xf32>
    %27 = tpu.reciprocal %22 {approx = true} : vector<1x128xf32> -> vector<1x128xf32>
    %28 = vector.broadcast %27 : vector<1x128xf32> to vector<32x128xf32>
    %29 = arith.mulf %26, %28 : vector<32x128xf32>
    %30 = vector.broadcast %10 : vector<32x1xf32> to vector<32x128xf32>
    %31 = arith.addf %29, %30 : vector<32x128xf32>
    %c0_18 = arith.constant 0 : index
    %32 = memref.load %arg8[%c0_18] : memref<1xf32, #tpu.memory_space<smem>>
    %33 = vector.broadcast %32 : f32 to vector<32x128xf32>
    %34 = arith.mulf %33, %31 : vector<32x128xf32>
    %35 = arith.addf %34, %4 : vector<32x128xf32>
    %c0_19 = arith.constant 0 : index
    %c0_20 = arith.constant 0 : index
    %c0_21 = arith.constant 0 : index
    %36 = vector.load %arg9[%c0_19, %c0_20, %c0_21] : memref<1x32x128xf32, #tpu.memory_space<vmem>>, vector<1x32x128xf32>
    %37 = vector.shape_cast %36 : vector<1x32x128xf32> to vector<32x128xf32>
    %38 = vector.shape_cast %35 : vector<32x128xf32> to vector<1x32x128xf32>
    tpu.vector_store %arg9[%c0_19, %c0_20, %c0_21], %38 {strides = array<i32>} : memref<1x32x128xf32, #tpu.memory_space<vmem>>, vector<1x32x128xf32>,
    return
  }
  func.func @transform_0(%arg0: i32, %arg1: i32) -> (i32, i32, i32) {
    %c0_i32 = arith.constant 0 : i32
    %c0_i32_0 = arith.constant 0 : i32
    return %arg0, %c0_i32, %arg1 : i32, i32, i32
  }
  func.func @transform_2(%arg0: i32, %arg1: i32) -> (i32, i32) {
    %c0_i32 = arith.constant 0 : i32
    %c0_i32_0 = arith.constant 0 : i32
    %c0_i32_1 = arith.constant 0 : i32
    return %c0_i32, %c0_i32_0 : i32, i32
  }
  func.func @transform_3(%arg0: i32, %arg1: i32) -> (i32, i32) {
    %c0_i32 = arith.constant 0 : i32
    %c0_i32_0 = arith.constant 0 : i32
    %c0_i32_1 = arith.constant 0 : i32
    return %c0_i32, %c0_i32_0 : i32, i32
  }
  func.func @transform_4(%arg0: i32, %arg1: i32) -> (i32, i32) {
    %c0_i32 = arith.constant 0 : i32
    %c0_i32_0 = arith.constant 0 : i32
    %c0_i32_1 = arith.constant 0 : i32
    return %c0_i32, %c0_i32_0 : i32, i32
  }
  func.func @transform_5(%arg0: i32, %arg1: i32) -> (i32, i32) {
    %c0_i32 = arith.constant 0 : i32
    %c0_i32_0 = arith.constant 0 : i32
    %c0_i32_1 = arith.constant 0 : i32
    return %c0_i32, %c0_i32_0 : i32, i32
  }
  func.func @transform_6(%arg0: i32, %arg1: i32) -> i32 {
    %c0_i32 = arith.constant 0 : i32
    %c0_i32_0 = arith.constant 0 : i32
    return %c0_i32 : i32
  }
  func.func @transform_7(%arg0: i32, %arg1: i32) -> (i32, i32, i32) {
    %c0_i32 = arith.constant 0 : i32
    %c0_i32_0 = arith.constant 0 : i32
    return %arg0, %c0_i32, %arg1 : i32, i32, i32
  }
}

</mosaic_0001>

<bundles_post_ra>
// kernel: tpu_custom_call.1
= control target key start
LH: loop header
LB: loop body
LE: loop exit
PB: predicated region body
PF: predicated region fallthrough
CT: control target
= control target key end

     0   :  { %s2385_s0 = inlined_call_operand.hbm [shape: f32[2,32,256], index: 0, kind: input, shape index: {}]   ;;  %s2386_s1 = inlined_call_operand.vmem [shape: bf16[2,32,256], index: 1, kind: input, shape index: {}]   ;;  %s2387_s2 = inlined_call_operand.hbm [shape: bf16[32,32], index: 2, kind: input, shape index: {}]   ;;  %s2388_s3 = inlined_call_operand.vmem [shape: f32[32,1], index: 3, kind: input, shape index: {}]   ;;  %s2389_s4 = inlined_call_operand.vmem [shape: bf16[32,32], index: 4, kind: input, shape index: {}]   ;;  %s2390_s5 = inlined_call_operand.vmem [shape: f32[32,1], index: 5, kind: input, shape index: {}]   ;;  %s2391_s6 = inlined_call_operand.<no memory space> [shape: f32[1], index: 6, kind: input, shape index: {}]   ;;  %s2392_s7 = inlined_call_operand.hbm [shape: f32[2,32,256], index: 7, kind: output, shape index: {}]  }
   0x1   :  { %2405 = sst [smem:[#allocation21_spill]] %s2387_s2 }
   0x2   :  { %12 = sst [smem:[#allocation4]] %s2391_s6 }
   0x3   :  { %13 = vsyncpa [#allocation6], 0 }
   0x4   :  { %15 = vsyncpa [#allocation6 + $0x1], 0 }
   0x5   :  { %16 = vsyncpa [#allocation9], 0 }
   0x6   :  { %17 = vsyncpa [#allocation7], 0 }
   0x7   :  { %19 = vsyncpa [#allocation7 + $0x1], 0  ;;  %s1772_s26 = smov 0   ;;  %s1774_s27 = smov 0  }
   0x8   :  { %s1776_s28 = smov 0   ;;  %s1778_s29 = smov 0  }
   0x9   :  { %s1780_s30 = smov 0   ;;  %s1782_s8 = smov 0  }
   0xa   :  { %s1784_s9 = smov 0   ;;  %s1786_s6 = smov 0  }
   0xb LB: > { %2406 = sst [smem:[#allocation16_spill]] %s1687_s26  ;;  %s1231_s10 = sadd.s32 4294967295, %s1715_s6   ;;  %s1715_s6 = sphi %s1786_s6, %s25_s6   ;;  %s1711_s9 = sphi %s1784_s9, %s2437_s9   ;;  %s1707_s8 = sphi %s1782_s8, %s2436_s8   ;;  %s1703_s30 = sphi %s1780_s30, %s2435_s30   ;;  %s1699_s29 = sphi %s1778_s29, %s2430_s29   ;;  %s1695_s28 = sphi %s1776_s28, %s2434_s28   ;;  %s1691_s27 = sphi %s1774_s27, %s2433_s27   ;;  %s1687_s26 = sphi %s1772_s26, %s2432_s26  }
   0xc   : > { %2407 = sst [smem:[#allocation17_spill]] %s1707_s8  ;;  %s1232_s11 = sadd.s32 4294967294, %s1715_s6  }
   0xd   : > { %2408 = sst [smem:[#allocation18_spill]] %s1715_s6  ;;  %p53_p0 = scmp.ne.s32.totalorder %s1695_s28, %s1691_s27 }
   0xe   : > { %p54_p1 = scmp.eq.s32.totalorder %s1715_s6, 0  ;;  %p59_p2 = scmp.ne.s32.totalorder %s1691_s27, %s1687_s26 }
   0xf   : > { %p1820_p3 = scmp.eq.s32.totalorder %s1231_s10, 0  ;;  %p190_p4 = scmp.eq.s32.totalorder %s1231_s10, 3 }
  0x10   : > { %p1824_p5 = por %p54_p1, %p53_p0  ;;  %p196_p6 = scmp.eq.s32.totalorder %s1232_s11, 3 }
  0x11   : > { %s2409_s13 = scalar_select %p1820_p3, 1, 0 }
  0x12   : > { %p1830_p7 = por %p1820_p3, %p59_p2  ;;  %p1834_p8 = por %p190_p4, %p53_p0 }
  0x13   : > { %p1838_p9 = por %p196_p6, %p59_p2  ;;  %p1233_p10 = scmp.ge.s32.totalorder %s1715_s6, 1 }
  0x14   : > { %s2411_s15 = scalar_select %p1830_p7, 1, 0 }
  0x15   : > { %s2412_s16 = scalar_select %p1834_p8, 1, 0 }
  0x16   : > { %s2413_s17 = scalar_select %p1838_p9, 1, 0 }
  0x17   : > { %p203_p11 = scmp.lt.s32.totalorder %s1715_s6, 5  ;;  %s1717_s19 = smov [#allocation8]  }
  0x18   : > { %2414 = sst [smem:[#allocation19_spill]] %s2413_s17  ;;  %s215_s20 = sshll.u32 %s1717_s19, 4  ;;  %s216_s20 = int_to_ptr.vmem [resolvable:$true] %s215_s20 }
  0x19   : > { %p1844_p12 = pnand %p1233_p10, %p203_p11  ;;  %p1404_p0 = scmp.lt.s32.totalorder %s1715_s6, 4 }
  0x1a   : > { %s2418_s2 = sld [smem:[#allocation21_spill]] }
  0x1b   : > { %s2415_s18 = scalar_select %p1844_p12, 1, 0 }
  0x1c   : > { %p1391_p13 = pneg %p1844_p12  ;;  %p1859_p2 = pnand %p1404_p0, %p1824_p5 }
  0x1e   : > { %p1853_p1 = pnand %p1391_p13, %p1820_p3 }
  0x1f   : > { %s2417_s22 = scalar_select %p1859_p2, 1, 0 }
  0x20   : > { %s1553_s25 = scalar_lea.hbm %s2418_s2, 256  ;;  %p1555_p6 = pneg %p1853_p1 }
  0x21   : > { %p1554_p4 = scmp.ne.s32.totalorder %s2418_s2, %s1553_s25  ;;  %p1560_p13 = scmp.lt.u32.totalorder %s1553_s25, %s2418_s2 }
  0x23   : > { %p1556_p10 = pnand %p1555_p6, %p1554_p4 }
  0x25   : > { %p1557_p11 = pneg %p1556_p10 }
  0x27   : > { %p1562_p5 = pnand %p1560_p13, %p1557_p11 }
  0x29   : > { %1565 = shalt.err (!%p1562_p5)
}
  0x2a   : > { %s1566_s14 = scalar_lea.vmem %s216_s20, 256  ;;  %p1574_p3 = scmp.lt.s32.totalorder %s216_s20, %s216_s20 }
  0x2b   : > { %p1567_p0 = scmp.ne.s32.totalorder %s216_s20, %s1566_s14  ;;  %p1575_p7 = scmp.lt.s32.totalorder %s1566_s14, %s1566_s14 }
  0x2d   : > { %p1569_p9 = pnand %p1567_p0, %p1555_p6  ;;  %p1576_p12 = por %p1575_p7, %p1574_p3 }
  0x2f   : > { %p1570_p8 = pneg %p1569_p9 }
  0x31   : > { %p1577_p2 = pnand %p1576_p12, %p1570_p8 }
  0x33   : > { %1580 = shalt.err (!%p1577_p2)
}
  0x34   : > { %s1718_s23 = smov 64   ;;  %s1719_s12 = smov 4  }
  0x35   : > { %1394 = dma.hbm_to_vmem [thread:$0]  (!%p1853_p1), %s2418_s2, 256, %s216_s20, [#allocation9], %s1718_s23, %s1718_s23, %s1719_s12  }
  0x36   : > { %s34_s10 = sadd.s32 1, %s1707_s8  ;;  %s37_s11 = sadd.s32 1, %s1711_s9 }
  0x37   : > { %p35_p3 = scmp.ge.s32.totalorder %s34_s10, 2  ;;  %s241_s19 = sand.u32 1, %s1695_s28  }
  0x38   : > { %s1237_s14 = sshll.u32 %s1711_s9, 3  ;;  %s1236_s21 = sshll.u32 %s241_s19, 5 }
  0x39   : > { %s2439_s10 = smov (%p35_p3, %s34_s10), 0  ;;  %s2441_s11 = smov (!%p35_p3, %s37_s11), %s1711_s9 }
  0x3a   : > { %2419 = sst [smem:[#allocation20_spill]] %s2439_s10  ;;  %s42_s17 = ssub.s32 %s1707_s8, %s2439_s10 }
  0x3b   : > { %p39_p7 = scmp.ge.s32.totalorder %s2441_s11, 2  ;;  %s250_s26 = sadd.s32 %s1707_s8, %s1237_s14 }
  0x3c   : > { %s1238_s20 = sshll.u32 %s250_s26, 7  ;;  %s245_s23 = scalar_lea.vmem [#allocation5], %s1236_s21 }
  0x3d   : > { %s2443_s11 = smov (%p39_p7, %s2441_s11), 0  ;;  %s253_s12 = sshll.u32 %s245_s23, 4  ;;  %s1898_s12 = int_to_ptr.vmem [resolvable:$true] %s253_s12 }
  0x3e   : > { %s41_s24 = ssub.s32 %s1711_s9, %s2443_s11  ;;  %s1896_s6 = scalar_lea.hbm %s2385_s0, %s1238_s20 }
  0x3f   : > { %s43_s10 = sor.u32 %s42_s17, %s41_s24  ;;  %s2420_s14 = sadd.s32 1, %s1695_s28 }
  0x40   : > { %p44_p8 = scmp.eq.s32.totalorder %s43_s10, 0  ;;  %s1905_s26 = scalar_lea.sflag [#allocation6], %s241_s19 }
  0x41   : > { %s1581_s21 = scalar_lea.hbm %s1896_s6, 512  ;;  %p2421_p12 = scmp.ne.s32.totalorder %s2417_s22, 0 }
  0x42   : > { %s1903_s8 = scalar_select %p44_p8, %s1695_s28, %s2420_s14  }
  0x43   : > { %p1582_p9 = scmp.ne.s32.totalorder %s1896_s6, %s1581_s21  ;;  %p1583_p1 = pneg %p2421_p12 }
  0x44   : > { %s1586_s17 = scalar_lea.hbm %s2385_s0, 2048  ;;  %p1587_p6 = scmp.lt.u32.totalorder %s1896_s6, %s2385_s0 }
  0x45   : > { %p1584_p2 = pnand %p1583_p1, %p1582_p9  ;;  %p1588_p10 = scmp.lt.u32.totalorder %s1586_s17, %s1581_s21 }
  0x46   : > { %p1590_p13 = scmp.lt.u32.totalorder %s1581_s21, %s1896_s6 }
  0x47   : > { %p1585_p4 = pneg %p1584_p2  ;;  %p1589_p11 = por %p1588_p10, %p1587_p6 }
  0x49   : > { %p1591_p5 = por %p1590_p13, %p1589_p11 }
  0x4b   : > { %p1592_p0 = pnand %p1591_p5, %p1585_p4 }
  0x4d   : > { %1595 = shalt.err (!%p1592_p0)
}
  0x4e   : > { %s1596_s10 = scalar_lea.vmem %s1898_s12, 512  ;;  %s1720_s19 = smov [#allocation5]  }
  0x4f   : > { %p1597_p3 = scmp.ne.s32.totalorder %s1898_s12, %s1596_s10  ;;  %s1601_s25 = sshll.u32 %s1720_s19, 4  ;;  %s1602_s25 = int_to_ptr.vmem [resolvable:$false] %s1601_s25 }
  0x50   : > { %s1603_s14 = scalar_lea.vmem %s1602_s25, 1024  ;;  %p1604_p9 = scmp.lt.s32.totalorder %s1898_s12, %s1602_s25 }
  0x51   : > { %p1599_p7 = pnand %p1597_p3, %p1583_p1  ;;  %p1605_p2 = scmp.lt.s32.totalorder %s1603_s14, %s1596_s10 }
  0x53   : > { %p1600_p8 = pneg %p1599_p7  ;;  %p1606_p6 = por %p1605_p2, %p1604_p9 }
  0x55   : > { %p1607_p10 = pnand %p1606_p6, %p1600_p8 }
  0x57   : > { %1610 = shalt.err (!%p1607_p10)
}
  0x58   : > { %s1721_s21 = smov 256   ;;  %s1722_s2 = smov 128  }
  0x59   : > { %s1723_s20 = smov 8   ;;  %p2422_p1 = scmp.ne.s32.totalorder %s2415_s18, 0 }
  0x5a   : > { %1398 = dma.hbm_to_vmem [thread:$0]  (!%p2421_p12), %s1896_s6, 512, %s1898_s12, %s1905_s26, %s1721_s21, %s1722_s2, %s1723_s20  }
  0x5b   : > { %265 = sbr.rel (%p2422_p1) target bundleno = 1183 (0x49f), region = 44  ;;  %s1936_s17 = sand.u32 (!%p2422_p1), 1, %s1691_s27  }
  0x5c   : > { %s1240_s23 = sshll.u32 (!%p2422_p1), %s1936_s17, 5  ;;  %s268_s24 = scalar_lea.sflag (!%p2422_p1), [#allocation6], %s1936_s17 }
  0x5d   : > { %s1940_s10 = scalar_lea.vmem (!%p2422_p1), [#allocation5], %s1240_s23  ;;  %p2423_p4 = scmp.ne.s32.totalorder (!%p2422_p1), %s2411_s15, 0 }
  0x62   : > { %1672 = dma.done.wait (%p2423_p4), %s268_s24, 512  }
  0x63   : > { %1674 = vsyncadd (%p2423_p4), %s268_s24, 4294966784  ;;  %p2424_p12 = scmp.ne.s32.totalorder %s2409_s13, 0 }
  0x65   : > { %1676 = dma.done.wait (%p2424_p12), [#allocation9], 256  }
  0x66   : > { %1678 = vsyncadd (%p2424_p12), [#allocation9], 4294967040  ;;  %s1950_s6 = scalar_lea.vmem [#allocation10], %s1240_s23  ;;  %p1243_p11 = scmp.ne.s32.totalorder %s1699_s29, 0 }
  0x67   : > { %s1276_s18 = sshll.u32 (!%p1243_p11), %s1703_s30, 5 }
  0x68   : > { %308 = sbr.rel (%p1243_p11) target bundleno = 114 (0x72), region = 56  ;;  %s311_s26 = scalar_lea.vmem (!%p1243_p11), %s2386_s1, %s1276_s18 }
  0x69   : > { %v329_v0 = vld [vmem:[%s311_s26] sm:$0xf] (!%p1243_p11)  ;;  %v331_v1 = vld [vmem:[%s311_s26 + $0x8] sm:$0xf] (!%p1243_p11)  ;;  %v333_v2 = vld [vmem:[%s311_s26 + $0x4] sm:$0xf] (!%p1243_p11) }
  0x6a   : > { %330 = vst [vmem:[#allocation2] sm:$0xf] (!%p1243_p11), %v329_v0  ;;  %332 = vst [vmem:[#allocation2 + $0x4] sm:$0xf] (!%p1243_p11), %v331_v1  ;;  %v335_v3 = vld [vmem:[%s311_s26 + $0xc] sm:$0xff] (!%p1243_p11)  }
  0x6b   : > { %334 = vst [vmem:[#allocation2 + $0x8] sm:$0xf] (!%p1243_p11), %v333_v2  ;;  %v339_v4 = vld [vmem:[%s311_s26 + $0x18] sm:$0xf] (!%p1243_p11)  ;;  %v341_v5 = vld [vmem:[%s311_s26 + $0x14] sm:$0xf] (!%p1243_p11) }
  0x6c   : > { %336 = vst [vmem:[#allocation2 + $0xc] sm:$0xff] (!%p1243_p11), %v335_v3   ;;  %340 = vst [vmem:[#allocation2 + $0x14] sm:$0xf] (!%p1243_p11), %v339_v4  ;;  %v343_v6 = vld [vmem:[%s311_s26 + $0x1c] sm:$0xf] (!%p1243_p11) }
  0x6d   : > { %342 = vst [vmem:[#allocation2 + $0x18] sm:$0xf] (!%p1243_p11), %v341_v5  ;;  %344 = vst [vmem:[#allocation2 + $0x1c] sm:$0xf] (!%p1243_p11), %v343_v6 }
  0x6f   : > { %391 = vsyncadd [#allocation3], 512 }
  0x70   : > { %1679 = dma.done.wait [#allocation3], 512 }
  0x71   : > { %1680 = vsyncadd [#allocation3], 4294966784 }
  0x72 PF: > { %v1958_v7 = vld [vmem:[%s1940_s10] sm:$0xff]  ;;  %v1961_v8 = vld [vmem:[%s1940_s10 + $0x8] sm:$0xff]  ;;  %v1964_v9 = vld [vmem:[%s1940_s10 + $0x10] sm:$0xff]  ;;  %vm452_vm0 = vcmask 261120   ;;  %v1724_v12 = vmov 0   ;;  %s1082_s21 = sld [smem:[#allocation4]] }
  0x73   : > { %v400_v10 = vpack.c.bf16 %v1961_v8, %v1958_v7  ;;  %v1969_v11 = vld [vmem:[%s1940_s10 + $0x18] sm:$0xff]  ;;  %1481 = vset.pattern.permute.xlu0 %v1724_v12  ;;  %1482 = vset.pattern.permute.xlu1 %v1724_v12  ;;  %v1483_v14 = vld [vmem:[#allocation8] sm:$0xff]   ;;  %v416_v16 = vld [vmem:[%s2388_s3 + $0x10] sm:$0xff]  ;;  %s1271_s2 = sshll.u32 %s1703_s30, 3  ;;  %s1111_s30 = sshll.u32 %s1950_s6, 4  ;;  %s2320_s30 = int_to_ptr.vmem [resolvable:$true] %s1111_s30 }
  0x74   : > { %v401_v13 = vpack.c.bf16 %v1969_v11, %v1964_v9  ;;  %v414_v15 = vld [vmem:[%s2388_s3] sm:$0xff]  ;;  %1335 = vmatprep.mubr.msk.bf16.mxu0 %vm452_vm0, %v1483_v14  ;;  %v1484_v17 = vld [vmem:[#allocation8 + $0x8] sm:$0xff]   ;;  %434 = vperm.xlu1 %1482, %v416_v16   ;;  %v417_v19 = vld [vmem:[%s2388_s3 + $0x18] sm:$0xff]  ;;  %s1108_s20 = sadd.s32 %s1699_s29, %s1271_s2  ;;  %s1097_s18 = scalar_lea.sflag [#allocation7], %s1936_s17 }
  0x75   : > { %1331 = vmatprep.subr.bf16.mxu0 %v400_v10  ;;  %424 = vperm.xlu0 %1481, %v414_v15   ;;  %v415_v18 = vld [vmem:[%s2388_s3 + $0x8] sm:$0xff]  ;;  %v1987_v21 = vld [vmem:[#allocation2] sm:$0xff]  ;;  %v420_v26 = vld [vmem:[%s2390_s5 + $0x10] sm:$0xff]  ;;  %s1272_s23 = sshll.u32 %s1108_s20, 7  ;;  %s1611_s22 = scalar_lea.vmem %s2320_s30, 512 }
  0x76   : > { %1332 = vmatpush3.bf16.msra.mxu0 %v400_v10  ;;  %v403_v20 = vld [vmem:[#allocation2 + $0x8] sm:$0xff]  ;;  %v1990_v22 = vld [vmem:[#allocation2 + $0x10] sm:$0xff]  ;;  %v418_v24 = vld [vmem:[%s2390_s5] sm:$0xff]  ;;  %s2327_s10 = scalar_lea.hbm %s2392_s7, %s1272_s23  ;;  %p1612_p13 = scmp.ne.s32.totalorder %s2320_s30, %s1611_s22 }
  0x77   : > { %1333 = vmatprep.subr.bf16.mxu0 %v401_v13  ;;  %v1993_v23 = vld [vmem:[#allocation2 + $0x18] sm:$0xff]  ;;  %v419_v25 = vld [vmem:[%s2390_s5 + $0x8] sm:$0xff]  ;;  %p2425_p5 = scmp.ne.s32.totalorder %s2412_s16, 0  ;;  %s1725_s12 = smov [#allocation10]  }
  0x78   : > { %439 = vperm.xlu1 %1482, %v417_v19   ;;  %v421_v27 = vld [vmem:[%s2390_s5 + $0x18] sm:$0xff]  ;;  %s1615_s26 = sshll.u32 %s1725_s12, 4  ;;  %s1616_s26 = int_to_ptr.vmem [resolvable:$false] %s1615_s26 }
  0x79   : > { %429 = vperm.xlu0 %1481, %v415_v18   ;;  %p1613_p0 = pnand %p1612_p13, %p2425_p5  ;;  %s1617_s13 = scalar_lea.vmem %s1616_s26, 1024 }
  0x7a   : > { %1334 = vmatpush3.bf16.msra.mxu0 %v401_v13  ;;  %p1618_p7 = scmp.lt.s32.totalorder %s2320_s30, %s1616_s26  ;;  %p1619_p8 = scmp.lt.s32.totalorder %s1617_s13, %s1611_s22 }
  0x7b   : > { %p1614_p3 = pneg %p1613_p0 }
  0x7c   : > { %p1620_p9 = por %p1619_p8, %p1618_p7 }
  0x7d   : > { %1336 = vmatmul.mubr.msk.bf16.vlgmr.msra.gmra.mrb[0].mxu0 %vm452_vm0, %v1484_v17 }
  0x7e   : > { %969 = vmatprep.mubr.bf16.mxu0 %v403_v20  ;;  %p1621_p2 = pnand %p1620_p9, %p1614_p3 }
  0x97   : > { %510 = vxpose.xlu0.c.b16.start [1/2] (short) %v1987_v21, 128 }
  0x9b   : > { %511 = vxpose.xlu0.c.b16.end [2/2] (short) %v1990_v22, 128  ;;  %526 = vxpose.xlu1.c.b16.start [1/2] (short) %v403_v20, 128 }
  0x9f   : > { %527 = vxpose.xlu1.c.b16.end [2/2] (short) %v1993_v23, 128 }
  0xbb   : > { %1065 = vperm.xlu1 %1482, %v419_v25  }
  0xbc   : > { %1060 = vperm.xlu0 %1481, %v418_v24  }
  0xbf   : > { %1075 = vperm.xlu1 %1482, %v421_v27  }
  0xc0   : > { %1070 = vperm.xlu0 %1481, %v420_v26  }
  0xf3   : > { %v435_v31 = vpop.permute.xlu1 %434 }
  0xf4   : > { %v425_v28 = vpop.permute.xlu0 %424 }
  0xf7   : > { %v440_v33 = vpop.permute.xlu1 %439 }
  0xf8   : > { %v430_v29 = vpop.permute.xlu0 %429 }
  0xfd   : > { %v518_v30 = vpop.trf.xlu0 }
  0xfe   : > { %1343 = vmatprep.mubr.msk.bf16.mxu1 %vm452_vm0, %v518_v30 }
 0x101   : > { %v519_v35 = vpop.trf.xlu0  ;;  %v534_v48 = vpop.trf.xlu1 }
 0x105   : > { %v520_v44 = vpop.trf.xlu0  ;;  %v535_v50 = vpop.trf.xlu1 }
 0x109   : > { %v521_v45 = vpop.trf.xlu0  ;;  %v536_v52 = vpop.trf.xlu1 }
 0x10d   : > { %v522_v46 = vpop.trf.xlu0  ;;  %v537_v53 = vpop.trf.xlu1 }
 0x111   : > { %v523_v47 = vpop.trf.xlu0  ;;  %v538_v54 = vpop.trf.xlu1 }
 0x115   : > { %v524_v49 = vpop.trf.xlu0  ;;  %v539_v55 = vpop.trf.xlu1 }
 0x119   : > { %v525_v51 = vpop.trf.xlu0  ;;  %v540_v56 = vpop.trf.xlu1 }
 0x11d   : > { %v541_v57 = vpop.trf.xlu1 }
 0x150   : > { %v1337_v32 = vpop.f32.mrb[0].mxu0 }
 0x151   : > { %v493_v34 = vpop.f32.mrb[1].mxu0  ;;  %v502_v37 = vadd.f32 %v1337_v32, %v435_v31 }
 0x152   : > { %v1338_v36 = vpop.f32.mrb[2].mxu0  ;;  %v494_v40 = vadd.f32 %v493_v34, %v425_v28 }
 0x153   : > { %v505_v38 = vadd.f32 %v1338_v36, %v440_v33  ;;  %v496_v39 = vpop.f32.mrb[3].mxu0 }
 0x154   : > { %v497_v41 = vadd.f32 %v496_v39, %v430_v29 }
 0x155   : > { %v509_v42 = vpack.c.bf16 %v505_v38, %v502_v37 }
 0x156   : > { %v508_v43 = vpack.c.bf16 %v497_v41, %v494_v40 }
 0x158   : > { %1339 = vmatprep.subr.bf16.mxu1 %v508_v43 }
 0x159   : > { %1340 = vmatpush3.bf16.msra.mxu1 %v508_v43 }
 0x15a   : > { %1341 = vmatprep.subr.bf16.mxu1 %v509_v42 }
 0x15d   : > { %1342 = vmatpush3.bf16.msra.mxu1 %v509_v42 }
 0x160   : > { %1344 = vmatmul.mubr.msk.bf16.vlgmr.msra.gmra.mrb[0].mxu1 %vm452_vm0, %v519_v35 }
 0x161   : > { %1347 = vmatprep.mubr.msk.bf16.mxu1 %vm452_vm0, %v520_v44 }
 0x168   : > { %1348 = vmatmul.mubr.msk.bf16.gmra.mrb[4].mxu1 %vm452_vm0, %v521_v45 }
 0x169   : > { %1351 = vmatprep.mubr.msk.bf16.mxu1 %vm452_vm0, %v522_v46 }
 0x170   : > { %1352 = vmatmul.mubr.msk.bf16.gmra.mrb[8].mxu1 %vm452_vm0, %v523_v47 }
 0x171   : > { %1355 = vmatprep.mubr.msk.bf16.mxu1 %vm452_vm0, %v524_v49 }
 0x178   : > { %1356 = vmatmul.mubr.msk.bf16.gmra.mrb[12].mxu1 %vm452_vm0, %v525_v51 }
 0x179   : > { %1359 = vmatprep.mubr.msk.bf16.mxu1 %vm452_vm0, %v534_v48 }
 0x180   : > { %1360 = vmatmul.mubr.msk.bf16.gmra.mrb[16].mxu1 %vm452_vm0, %v535_v50 }
 0x181   : > { %1363 = vmatprep.mubr.msk.bf16.mxu1 %vm452_vm0, %v536_v52 }
 0x188   : > { %1364 = vmatmul.mubr.msk.bf16.gmra.mrb[20].mxu1 %vm452_vm0, %v537_v53 }
 0x189   : > { %1367 = vmatprep.mubr.msk.bf16.mxu1 %vm452_vm0, %v538_v54 }
 0x190   : > { %1368 = vmatmul.mubr.msk.bf16.gmra.mrb[24].mxu1 %vm452_vm0, %v539_v55 }
 0x191   : > { %1371 = vmatprep.mubr.msk.bf16.mxu1 %vm452_vm0, %v540_v56 }
 0x198   : > { %1372 = vmatmul.mubr.msk.bf16.gmra.mrb[28].mxu1 %vm452_vm0, %v541_v57 }
 0x233   : > { %v2024_v58 = vpop.f32.mrb[0].mxu1 }
 0x234   : > { %v2026_v59 = vpop.f32.mrb[1].mxu1 }
 0x235   : > { %v2028_v60 = vpop.f32.mrb[2].mxu1 }
 0x236   : > { %v2030_v61 = vpop.f32.mrb[3].mxu1 }
 0x23b   : > { %v2032_v62 = vpop.f32.mrb[4].mxu1 }
 0x23c   : > { %v753_v63 = vmax.f32 %v2024_v58, %v2032_v62  ;;  %v2036_v0 = vpop.f32.mrb[5].mxu1 }
 0x23d   : > { %v751_v1 = vmax.f32 %v2026_v59, %v2036_v0  ;;  %v2040_v2 = vpop.f32.mrb[6].mxu1 }
 0x23e   : > { %v754_v3 = vmax.f32 %v2028_v60, %v2040_v2  ;;  %v2044_v4 = vpop.f32.mrb[7].mxu1 }
 0x23f   : > { %v752_v5 = vmax.f32 %v2030_v61, %v2044_v4 }
 0x243   : > { %v2048_v6 = vpop.f32.mrb[8].mxu1 }
 0x244   : > { %v757_v10 = vmax.f32 %v753_v63, %v2048_v6  ;;  %v2051_v12 = vpop.f32.mrb[9].mxu1 }
 0x245   : > { %v755_v13 = vmax.f32 %v751_v1, %v2051_v12  ;;  %v2054_v14 = vpop.f32.mrb[10].mxu1 }
 0x246   : > { %v758_v15 = vmax.f32 %v754_v3, %v2054_v14  ;;  %v2057_v16 = vpop.f32.mrb[11].mxu1 }
 0x247   : > { %v756_v17 = vmax.f32 %v752_v5, %v2057_v16 }
 0x24b   : > { %v2060_v18 = vpop.f32.mrb[12].mxu1 }
 0x24c   : > { %v761_v19 = vmax.f32 %v757_v10, %v2060_v18  ;;  %v2063_v20 = vpop.f32.mrb[13].mxu1 }
 0x24d   : > { %v759_v24 = vmax.f32 %v755_v13, %v2063_v20  ;;  %v2066_v25 = vpop.f32.mrb[14].mxu1 }
 0x24e   : > { %v762_v26 = vmax.f32 %v758_v15, %v2066_v25  ;;  %v2069_v27 = vpop.f32.mrb[15].mxu1 }
 0x24f   : > { %v760_v28 = vmax.f32 %v756_v17, %v2069_v27 }
 0x253   : > { %v2072_v29 = vpop.f32.mrb[16].mxu1 }
 0x254   : > { %v765_v30 = vmax.f32 %v761_v19, %v2072_v29  ;;  %v2075_v31 = vpop.f32.mrb[17].mxu1 }
 0x255   : > { %v763_v32 = vmax.f32 %v759_v24, %v2075_v31  ;;  %v2078_v33 = vpop.f32.mrb[18].mxu1 }
 0x256   : > { %v766_v34 = vmax.f32 %v762_v26, %v2078_v33  ;;  %v2081_v35 = vpop.f32.mrb[19].mxu1 }
 0x257   : > { %v764_v36 = vmax.f32 %v760_v28, %v2081_v35 }
 0x25b   : > { %v2084_v37 = vpop.f32.mrb[20].mxu1 }
 0x25c   : > { %v769_v38 = vmax.f32 %v765_v30, %v2084_v37  ;;  %v2087_v39 = vpop.f32.mrb[21].mxu1 }
 0x25d   : > { %v767_v40 = vmax.f32 %v763_v32, %v2087_v39  ;;  %v2090_v41 = vpop.f32.mrb[22].mxu1 }
 0x25e   : > { %v770_v42 = vmax.f32 %v766_v34, %v2090_v41  ;;  %v2093_v43 = vpop.f32.mrb[23].mxu1 }
 0x25f   : > { %v768_v44 = vmax.f32 %v764_v36, %v2093_v43 }
 0x263   : > { %v2096_v45 = vpop.f32.mrb[24].mxu1 }
 0x264   : > { %v773_v46 = vmax.f32 %v769_v38, %v2096_v45  ;;  %v2099_v47 = vpop.f32.mrb[25].mxu1 }
 0x265   : > { %v771_v48 = vmax.f32 %v767_v40, %v2099_v47  ;;  %v2102_v49 = vpop.f32.mrb[26].mxu1 }
 0x266   : > { %v774_v50 = vmax.f32 %v770_v42, %v2102_v49  ;;  %v2105_v51 = vpop.f32.mrb[27].mxu1 }
 0x267   : > { %v772_v52 = vmax.f32 %v768_v44, %v2105_v51 }
 0x26b   : > { %v2108_v53 = vpop.f32.mrb[28].mxu1 }
 0x26c   : > { %v777_v54 = vmax.f32 %v773_v46, %v2108_v53  ;;  %v2111_v55 = vpop.f32.mrb[29].mxu1 }
 0x26d   : > { %v775_v56 = vmax.f32 %v771_v48, %v2111_v55  ;;  %v2114_v57 = vpop.f32.mrb[30].mxu1 }
 0x26e   : > { %v778_v63 = vmax.f32 %v774_v50, %v2114_v57  ;;  %v2117_v1 = vpop.f32.mrb[31].mxu1 }
 0x26f   : > { %v776_v3 = vmax.f32 %v772_v52, %v2117_v1 }
 0x270   : > { %v780_v5 = vmax.f32 %v777_v54, %v778_v63 }
 0x271   : > { %v779_v10 = vmax.f32 %v775_v56, %v776_v3 }
 0x273   : > { %v781_v13 = vmax.f32 %v779_v10, %v780_v5 }
 0x275   : > { %v782_v15 = vrot.slane %v781_v13, 4 }
 0x277   : > { %v783_v17 = vmax.f32 %v781_v13, %v782_v15 }
 0x279   : > { %v784_v19 = vrot.slane %v783_v17, 2 }
 0x27b   : > { %v785_v24 = vmax.f32 %v783_v17, %v784_v19 }
 0x27d   : > { %v786_v26 = vrot.slane %v785_v24, 1 }
 0x27f   : > { %v2120_v28 = vmax.f32 %v785_v24, %v786_v26 }
 0x281   : > { %v788_v30 = vsub.f32 %v2026_v59, %v2120_v28  ;;  %v789_v32 = vsub.f32 %v2030_v61, %v2120_v28  ;;  %v790_v34 = vsub.f32 %v2024_v58, %v2120_v28  ;;  %v791_v36 = vsub.f32 %v2028_v60, %v2120_v28 }
 0x282   : > { %v792_v38 = vsub.f32 %v2036_v0, %v2120_v28  ;;  %v793_v40 = vsub.f32 %v2044_v4, %v2120_v28  ;;  %v794_v42 = vsub.f32 %v2032_v62, %v2120_v28  ;;  %v795_v59 = vsub.f32 %v2040_v2, %v2120_v28 }
 0x283   : > { %v796_v61 = vsub.f32 %v2051_v12, %v2120_v28  ;;  %v797_v58 = vsub.f32 %v2057_v16, %v2120_v28  ;;  %v798_v60 = vsub.f32 %v2048_v6, %v2120_v28  ;;  %v799_v0 = vsub.f32 %v2054_v14, %v2120_v28 }
 0x284   : > { %v800_v4 = vsub.f32 %v2063_v20, %v2120_v28  ;;  %v801_v62 = vsub.f32 %v2069_v27, %v2120_v28  ;;  %v802_v2 = vsub.f32 %v2060_v18, %v2120_v28  ;;  %v803_v12 = vsub.f32 %v2066_v25, %v2120_v28 }
 0x285   : > { %v804_v16 = vsub.f32 %v2075_v31, %v2120_v28  ;;  %v805_v6 = vsub.f32 %v2081_v35, %v2120_v28  ;;  %v806_v14 = vsub.f32 %v2072_v29, %v2120_v28  ;;  %v807_v20 = vsub.f32 %v2078_v33, %v2120_v28 }
 0x286   : > { %v808_v27 = vsub.f32 %v2087_v39, %v2120_v28  ;;  %v809_v18 = vsub.f32 %v2093_v43, %v2120_v28  ;;  %v810_v25 = vsub.f32 %v2084_v37, %v2120_v28  ;;  %v811_v31 = vsub.f32 %v2090_v41, %v2120_v28 }
 0x287   : > { %v812_v35 = vsub.f32 %v2099_v47, %v2120_v28  ;;  %v813_v29 = vsub.f32 %v2105_v51, %v2120_v28  ;;  %v814_v33 = vsub.f32 %v2096_v45, %v2120_v28  ;;  %v815_v39 = vsub.f32 %v2102_v49, %v2120_v28 }
 0x288   : > { %v816_v44 = vsub.f32 %v2111_v55, %v2120_v28  ;;  %v817_v46 = vsub.f32 %v2117_v1, %v2120_v28  ;;  %v818_v48 = vsub.f32 %v2108_v53, %v2120_v28  ;;  %v819_v50 = vsub.f32 %v2114_v57, %v2120_v28 }
 0x289   : > { %v820_v52 = vmul.f32 1.442695, %v788_v30  ;;  %v822_v54 = vmul.f32 1.442695, %v789_v32  ;;  %v824_v56 = vmul.f32 1.442695, %v790_v34 }
 0x28a   : > { %v826_v63 = vmul.f32 1.442695, %v791_v36  ;;  %v828_v3 = vmul.f32 1.442695, %v792_v38  ;;  %v830_v5 = vmul.f32 1.442695, %v793_v40 }
 0x28b   : > { %1487 = vpow2.f32 %v820_v52  ;;  %v832_v10 = vmul.f32 1.442695, %v794_v42  ;;  %v834_v13 = vmul.f32 1.442695, %v795_v59  ;;  %v836_v15 = vmul.f32 1.442695, %v796_v61 }
 0x28c   : > { %1489 = vpow2.f32 %v822_v54  ;;  %v838_v17 = vmul.f32 1.442695, %v797_v58  ;;  %v840_v19 = vmul.f32 1.442695, %v798_v60  ;;  %v842_v24 = vmul.f32 1.442695, %v799_v0 }
 0x28d   : > { %1491 = vpow2.f32 %v824_v56  ;;  %v844_v26 = vmul.f32 1.442695, %v800_v4  ;;  %v846_v30 = vmul.f32 1.442695, %v801_v62  ;;  %v848_v34 = vmul.f32 1.442695, %v802_v2 }
 0x28e   : > { %1493 = vpow2.f32 %v826_v63  ;;  %v850_v38 = vmul.f32 1.442695, %v803_v12  ;;  %v852_v42 = vmul.f32 1.442695, %v804_v16  ;;  %v854_v60 = vmul.f32 1.442695, %v805_v6 }
 0x28f   : > { %1495 = vpow2.f32 %v828_v3  ;;  %v856_v4 = vmul.f32 1.442695, %v806_v14  ;;  %v858_v16 = vmul.f32 1.442695, %v807_v20  ;;  %v860_v54 = vmul.f32 1.442695, %v808_v27 }
 0x290   : > { %1497 = vpow2.f32 %v830_v5  ;;  %v862_v14 = vmul.f32 1.442695, %v809_v18  ;;  %v864_v20 = vmul.f32 1.442695, %v810_v25  ;;  %v866_v43 = vmul.f32 1.442695, %v811_v31 }
 0x291   : > { %1499 = vpow2.f32 %v832_v10  ;;  %v868_v37 = vmul.f32 1.442695, %v812_v35  ;;  %v870_v41 = vmul.f32 1.442695, %v813_v29  ;;  %v872_v47 = vmul.f32 1.442695, %v814_v33 }
 0x292   : > { %1501 = vpow2.f32 %v834_v13  ;;  %v874_v51 = vmul.f32 1.442695, %v815_v39  ;;  %v876_v45 = vmul.f32 1.442695, %v816_v44  ;;  %v878_v49 = vmul.f32 1.442695, %v817_v46 }
 0x293   : > { %1503 = vpow2.f32 %v836_v15 }
 0x294   : > { %1505 = vpow2.f32 %v838_v17 }
 0x295   : > { %v2186_v32 = vpop.eup %1487  ;;  %1507 = vpow2.f32 %v840_v19 }
 0x296   : > { %v2188_v36 = vpop.eup %1489  ;;  %1509 = vpow2.f32 %v842_v24 }
 0x297   : > { %v2190_v40 = vpop.eup %1491  ;;  %1511 = vpow2.f32 %v844_v26  ;;  %v884_v59 = vadd.f32 %v2188_v36, %v2186_v32  ;;  %v921_v61 = vpack.c.bf16 %v2188_v36, %v2186_v32 }
 0x298   : > { %v2196_v58 = vpop.eup %1493  ;;  %1513 = vpow2.f32 %v846_v30  ;;  %v880_v30 = vmul.f32 1.442695, %v818_v48 }
 0x299   : > { %v2198_v0 = vpop.eup %1495  ;;  %1515 = vpow2.f32 %v848_v34  ;;  %v885_v62 = vadd.f32 %v2190_v40, %v884_v59  ;;  %v922_v2 = vpack.c.bf16 %v2196_v58, %v2190_v40 }
 0x29a   : > { %v2203_v12 = vpop.eup %1497  ;;  %1517 = vpow2.f32 %v850_v38  ;;  %v882_v38 = vmul.f32 1.442695, %v819_v50 }
 0x29b   : > { %v2205_v52 = vpop.eup %1499  ;;  %1519 = vpow2.f32 %v852_v42  ;;  %v886_v56 = vadd.f32 %v2196_v58, %v885_v62  ;;  %v923_v6 = vpack.c.bf16 %v2203_v12, %v2198_v0 }
 0x29c   : > { %v2210_v63 = vpop.eup %1501  ;;  %1521 = vpow2.f32 %v854_v60 }
 0x29d   : > { %v2215_v3 = vpop.eup %1503  ;;  %1523 = vpow2.f32 %v856_v4  ;;  %v887_v27 = vadd.f32 %v2198_v0, %v886_v56  ;;  %v924_v5 = vpack.c.bf16 %v2210_v63, %v2205_v52 }
 0x29e   : > { %v2223_v10 = vpop.eup %1505  ;;  %1525 = vpow2.f32 %v858_v16 }
 0x29f   : > { %v2228_v18 = vpop.eup %1507  ;;  %1527 = vpow2.f32 %v860_v54  ;;  %v888_v25 = vadd.f32 %v2203_v12, %v887_v27  ;;  %v925_v13 = vpack.c.bf16 %v2223_v10, %v2215_v3 }
 0x2a0   : > { %v2236_v15 = vpop.eup %1509  ;;  %1529 = vpow2.f32 %v862_v14 }
 0x2a1   : > { %v2241_v31 = vpop.eup %1511  ;;  %1531 = vpow2.f32 %v864_v20  ;;  %v889_v35 = vadd.f32 %v2205_v52, %v888_v25  ;;  %v926_v17 = vpack.c.bf16 %v2236_v15, %v2228_v18 }
 0x2a2   : > { %v2249_v19 = vpop.eup %1513  ;;  %1533 = vpow2.f32 %v866_v43 }
 0x2a3   : > { %v2254_v29 = vpop.eup %1515  ;;  %1535 = vpow2.f32 %v868_v37  ;;  %v890_v33 = vadd.f32 %v2210_v63, %v889_v35  ;;  %v927_v24 = vpack.c.bf16 %v2249_v19, %v2241_v31 }
 0x2a4   : > { %v2262_v26 = vpop.eup %1517  ;;  %1537 = vpow2.f32 %v870_v41 }
 0x2a5   : > { %v1520_v39 = vpop.eup %1519  ;;  %1539 = vpow2.f32 %v872_v47  ;;  %v891_v55 = vadd.f32 %v2215_v3, %v890_v33  ;;  %v928_v44 = vpack.c.bf16 %v2262_v26, %v2254_v29 }
 0x2a6   : > { %v1522_v34 = vpop.eup %1521  ;;  %1541 = vpow2.f32 %v874_v51 }
 0x2a7   : > { %v1524_v42 = vpop.eup %1523  ;;  %1543 = vpow2.f32 %v876_v45  ;;  %v892_v1 = vadd.f32 %v2223_v10, %v891_v55  ;;  %v929_v46 = vpack.c.bf16 %v1522_v34, %v1520_v39 }
 0x2a8   : > { %v1526_v59 = vpop.eup %1525  ;;  %1545 = vpow2.f32 %v878_v49 }
 0x2a9   : > { %v1528_v53 = vpop.eup %1527  ;;  %1547 = vpow2.f32 %v880_v30  ;;  %v893_v48 = vadd.f32 %v2228_v18, %v892_v1  ;;  %1299 = vmatprep.subr.bf16.mxu0 %v929_v46  ;;  %v930_v60 = vpack.c.bf16 %v1526_v59, %v1524_v42 }
 0x2aa   : > { %v1530_v4 = vpop.eup %1529  ;;  %1549 = vpow2.f32 %v882_v38  ;;  %1300 = vmatpush3.bf16.msra.mxu0 %v921_v61 }
 0x2ab   : > { %v1532_v57 = vpop.eup %1531  ;;  %v894_v28 = vadd.f32 %v2236_v15, %v893_v48  ;;  %1301 = vmatprep.subr.bf16.mxu0 %v930_v60  ;;  %v931_v50 = vpack.c.bf16 %v1530_v4, %v1528_v53 }
 0x2ac   : > { %v1534_v62 = vpop.eup %1533 }
 0x2ad   : > { %v1536_v16 = vpop.eup %1535  ;;  %v895_v54 = vadd.f32 %v2241_v31, %v894_v28  ;;  %v932_v56 = vpack.c.bf16 %v1534_v62, %v1532_v57  ;;  %v1485_v31 = vld [vmem:[%s2389_s4] sm:$0xff]  }
 0x2ae   : > { %v1538_v14 = vpop.eup %1537  ;;  %1302 = vmatpush3.bf16.msra.mxu0 %v922_v2 }
 0x2af   : > { %v1540_v20 = vpop.eup %1539  ;;  %v896_v27 = vadd.f32 %v2249_v19, %v895_v54  ;;  %1303 = vmatprep.subr.bf16.mxu0 %v931_v50  ;;  %v933_v32 = vpack.c.bf16 %v1538_v14, %v1536_v16 }
 0x2b0   : > { %v1542_v36 = vpop.eup %1541 }
 0x2b1   : > { %v1544_v61 = vpop.eup %1543  ;;  %v897_v43 = vadd.f32 %v2254_v29, %v896_v27  ;;  %v934_v37 = vpack.c.bf16 %v1542_v36, %v1540_v20 }
 0x2b2   : > { %v1546_v25 = vpop.eup %1545  ;;  %1304 = vmatpush3.bf16.msra.mxu0 %v923_v6 }
 0x2b3   : > { %v1548_v41 = vpop.eup %1547  ;;  %v898_v47 = vadd.f32 %v2262_v26, %v897_v43  ;;  %1305 = vmatprep.subr.bf16.mxu0 %v932_v56  ;;  %v935_v40 = vpack.c.bf16 %v1546_v25, %v1544_v61  ;;  %v1083_v56 = vstv %s1082_s21 }
 0x2b4   : > { %v1550_v58 = vpop.eup %1549 }
 0x2b5   : > { %v899_v2 = vadd.f32 %v1520_v39, %v898_v47  ;;  %v936_v35 = vpack.c.bf16 %v1550_v58, %v1548_v41 }
 0x2b6   : > { %1306 = vmatpush3.bf16.msra.mxu0 %v924_v5 }
 0x2b7   : > { %v900_v51 = vadd.f32 %v1522_v34, %v899_v2  ;;  %1307 = vmatprep.subr.bf16.mxu0 %v933_v32 }
 0x2b9   : > { %v901_v29 = vadd.f32 %v1524_v42, %v900_v51  ;;  %v1486_v42 = vld [vmem:[%s2389_s4 + $0x8] sm:$0xff]  }
 0x2ba   : > { %1308 = vmatpush3.bf16.msra.mxu0 %v925_v13 }
 0x2bb   : > { %v902_v0 = vadd.f32 %v1526_v59, %v901_v29  ;;  %1309 = vmatprep.subr.bf16.mxu0 %v934_v37 }
 0x2bd   : > { %v903_v12 = vadd.f32 %v1528_v53, %v902_v0 }
 0x2be   : > { %1310 = vmatpush3.bf16.msra.mxu0 %v926_v17 }
 0x2bf   : > { %v904_v6 = vadd.f32 %v1530_v4, %v903_v12  ;;  %1311 = vmatprep.subr.bf16.mxu0 %v935_v40  ;;  %v1061_v4 = vpop.permute.xlu0 %1060 }
 0x2c1   : > { %v905_v45 = vadd.f32 %v1532_v57, %v904_v6  ;;  %v1066_v57 = vpop.permute.xlu1 %1065 }
 0x2c2   : > { %1312 = vmatpush3.bf16.msra.mxu0 %v927_v24 }
 0x2c3   : > { %v906_v52 = vadd.f32 %v1534_v62, %v905_v45  ;;  %1313 = vmatprep.subr.bf16.mxu0 %v936_v35  ;;  %v1071_v54 = vpop.permute.xlu0 %1070 }
 0x2c5   : > { %v907_v63 = vadd.f32 %v1536_v16, %v906_v52 }
 0x2c6   : > { %1314 = vmatpush3.bf16.msra.mxu0 %v928_v44 }
 0x2c7   : > { %v908_v3 = vadd.f32 %v1538_v14, %v907_v63 }
 0x2c9   : > { %v909_v5 = vadd.f32 %v1540_v20, %v908_v3  ;;  %970 = vmatmul.mubr.bf16.vlgmr.msra.gmra.mrb[4].mxu0 %v1987_v21 }
 0x2ca   : > { %977 = vmatprep.mubr.bf16.mxu0 %v1993_v23 }
 0x2cb   : > { %v910_v10 = vadd.f32 %v1542_v36, %v909_v5 }
 0x2cd   : > { %v911_v18 = vadd.f32 %v1544_v61, %v910_v10  ;;  %v1076_v61 = vpop.permute.xlu1 %1075 }
 0x2cf   : > { %v912_v13 = vadd.f32 %v1546_v25, %v911_v18 }
 0x2d1   : > { %v913_v15 = vadd.f32 %v1548_v41, %v912_v13  ;;  %978 = vmatmul.mubr.bf16.gmra.mrb[8].mxu0 %v1990_v22 }
 0x2d2   : > { %1379 = vmatprep.mubr.msk.bf16.mxu0 %vm452_vm0, %v1485_v31 }
 0x2d3   : > { %v914_v17 = vadd.f32 %v1550_v58, %v913_v15 }
 0x2d5   : > { %v915_v1 = vrot.slane %v914_v17, 4 }
 0x2d7   : > { %v916_v46 = vadd.f32 %v915_v1, %v914_v17 }
 0x2d9   : > { %v917_v59 = vrot.slane %v916_v46, 2 }
 0x2db   : > { %v918_v53 = vadd.f32 %v917_v59, %v916_v46 }
 0x2dd   : > { %v919_v48 = vrot.slane %v918_v53, 1 }
 0x2df   : > { %v920_v60 = vadd.f32 %v919_v48, %v918_v53 }
 0x2e1   : > { %1551 = vrcp.f32 %v920_v60 }
 0x2eb   : > { %v1552_v28 = vpop.eup %1551 }
 0x39c   : > { %v1315_v19 = vpop.f32.mrb[4].mxu0 }
 0x39d   : > { %v1316_v33 = vpop.f32.mrb[5].mxu0 }
 0x39e   : > { %v1317_v24 = vadd.f32 %v1316_v33, %v1315_v19  ;;  %v1318_v26 = vpop.f32.mrb[6].mxu0 }
 0x39f   : > { %v1319_v21 = vpop.f32.mrb[7].mxu0 }
 0x3a0   : > { %v1320_v49 = vadd.f32 %v1319_v21, %v1318_v26 }
 0x3a2   : > { %v986_v23 = vpack.c.bf16 %v1320_v49, %v1317_v24 }
 0x3a4   : > { %v1321_v39 = vpop.f32.mrb[8].mxu0  ;;  %1375 = vmatprep.subr.bf16.mxu0 %v986_v23 }
 0x3a5   : > { %v1322_v30 = vpop.f32.mrb[9].mxu0  ;;  %1376 = vmatpush3.bf16.msra.mxu0 %v986_v23 }
 0x3a6   : > { %v1323_v55 = vadd.f32 %v1322_v30, %v1321_v39  ;;  %v1324_v22 = vpop.f32.mrb[10].mxu0 }
 0x3a7   : > { %v1325_v44 = vpop.f32.mrb[11].mxu0 }
 0x3a8   : > { %v1326_v34 = vadd.f32 %v1325_v44, %v1324_v22 }
 0x3aa   : > { %v987_v38 = vpack.c.bf16 %v1326_v34, %v1323_v55 }
 0x3ac   : > { %1377 = vmatprep.subr.bf16.mxu0 %v987_v38 }
 0x3ad   : > { %1378 = vmatpush3.bf16.msra.mxu0 %v987_v38 }
 0x3b0   : > { %1380 = vmatmul.mubr.msk.bf16.vlgmr.msra.gmra.mrb[12].mxu0 %vm452_vm0, %v1486_v42 }
 0x483   : > { %v1381_v50 = vpop.f32.mrb[12].mxu0 }
 0x484   : > { %v1056_v62 = vmul.f32 %v1552_v28, %v1381_v50  ;;  %v1038_v16 = vpop.f32.mrb[13].mxu0 }
 0x485   : > { %v1054_v14 = vmul.f32 %v1552_v28, %v1038_v16  ;;  %v1382_v20 = vpop.f32.mrb[14].mxu0 }
 0x486   : > { %v1080_v27 = vadd.f32 %v1071_v54, %v1056_v62  ;;  %v1057_v32 = vmul.f32 %v1552_v28, %v1382_v20  ;;  %v1041_v36 = vpop.f32.mrb[15].mxu0 }
 0x487   : > { %v1078_v43 = vadd.f32 %v1061_v4, %v1054_v14  ;;  %v1055_v37 = vmul.f32 %v1552_v28, %v1041_v36 }
 0x488   : > { %v1086_v25 = vmul.f32 %v1083_v56, %v1080_v27  ;;  %v1081_v41 = vadd.f32 %v1076_v61, %v1057_v32 }
 0x489   : > { %v1084_v47 = vmul.f32 %v1083_v56, %v1078_v43  ;;  %v1079_v40 = vadd.f32 %v1066_v57, %v1055_v37 }
 0x48a   : > { %v1090_v58 = vadd.f32 %v1086_v25, %v1964_v9  ;;  %v1087_v2 = vmul.f32 %v1083_v56, %v1081_v41 }
 0x48b   : > { %v1088_v35 = vadd.f32 %v1084_v47, %v1958_v7  ;;  %v1085_v51 = vmul.f32 %v1083_v56, %v1079_v40 }
 0x48c   : > { %1094 = vst [vmem:[%s1950_s6 + $0x10] sm:$0xff] %v1090_v58  ;;  %v1091_v29 = vadd.f32 %v1087_v2, %v1969_v11 }
 0x48d   : > { %1092 = vst [vmem:[%s1950_s6] sm:$0xff] %v1088_v35  ;;  %v1089_v9 = vadd.f32 %v1085_v51, %v1961_v8 }
 0x48e   : > { %1095 = vst [vmem:[%s1950_s6 + $0x18] sm:$0xff] %v1091_v29 }
 0x48f   : > { %1093 = vst [vmem:[%s1950_s6 + $0x8] sm:$0xff] %v1089_v9 }
 0x490   : > { %1624 = shalt.err (!%p1621_p2)
}
 0x491   : > { %s1625_s6 = scalar_lea.hbm %s2327_s10, 512  ;;  %s1629_s25 = scalar_lea.hbm %s2392_s7, 2048 }
 0x492   : > { %p1626_p6 = scmp.ne.s32.totalorder %s2327_s10, %s1625_s6  ;;  %p1630_p4 = scmp.lt.u32.totalorder %s2327_s10, %s2392_s7 }
 0x493   : > { %p1631_p12 = scmp.lt.u32.totalorder %s1629_s25, %s1625_s6  ;;  %p1633_p13 = scmp.lt.u32.totalorder %s1625_s6, %s2327_s10 }
 0x494   : > { %p1627_p10 = pnand %p1626_p6, %p2425_p5 }
 0x495   : > { %p1632_p11 = por %p1631_p12, %p1630_p4 }
 0x496   : > { %p1628_p1 = pneg %p1627_p10 }
 0x497   : > { %p1634_p0 = por %p1633_p13, %p1632_p11 }
 0x499   : > { %p1635_p3 = pnand %p1634_p0, %p1628_p1 }
 0x49b   : > { %1638 = shalt.err (!%p1635_p3)
}
 0x49c   : > { %s1726_s2 = smov 128   ;;  %s1727_s20 = smov 256  }
 0x49d   : > { %s1728_s23 = smov 8  }
 0x49e   : > { %1389 = dma.vmem_to_hbm [thread:$0]  (%p2425_p5), %s2320_s30, 512, %s2327_s10, %s1097_s18, %s1726_s2, %s1727_s20, %s1728_s23  }
 0x49f PF: > { %s2426_s29 = sld [smem:[#allocation18_spill]]  ;;  %s2427_s24 = sld [smem:[#allocation16_spill]] }
 0x4a0   : > { %s2428_s22 = sld [smem:[#allocation19_spill]] }
 0x4a5   : > { %p1406_p7 = scmp.ge.s32.totalorder %s2426_s29, 2  ;;  %s1126_s12 = sand.u32 1, %s2427_s24  }
 0x4a6   : > { %p2429_p8 = scmp.ne.s32.totalorder %s2428_s22, 0  ;;  %s1127_s26 = scalar_lea.sflag [#allocation7], %s1126_s12 }
 0x4a8   : > { %p1400_p9 = pnand %p1406_p7, %p2429_p8 }
 0x4aa   : > { %1682 = dma.done.wait (!%p1400_p9), %s1127_s26, 512  }
 0x4ab   : > { %1684 = vsyncadd (!%p1400_p9), %s1127_s26, 4294966784  ;;  %s25_s6 = sadd.s32 1, %s2426_s29   ;;  %s2430_s29 = sld [smem:[#allocation17_spill]] }
 0x4ac   : > { %p22_p2 = scmp.ge.s32.totalorder %s25_s6, 6   ;;  %s2431_s16 = sld [smem:[#allocation20_spill]] }
 0x4ad   : > { %s2432_s26 = smov %s1691_s27  ;;  %s2433_s27 = smov %s1695_s28 }
 0x4ae   : > { %s2434_s28 = smov %s1903_s8  ;;  %s2435_s30 = smov %s1711_s9 }
 0x4af   : > { %s2437_s9 = smov %s2443_s11  ;;  %24 = sbr.rel (!%p22_p2) target bundleno = 11 (0xb), region = 149 }
 0x4b2   : > { %s2436_s8 = smov %s2431_s16 }
 0x4b6   :  { %1132 = vsyncpa [#allocation6], 1 }
 0x4b7   :  { %1134 = vsyncpa [#allocation6 + $0x1], 1 }
 0x4b8   :  { %1135 = vsyncpa [#allocation9], 1 }
 0x4b9   :  { %1136 = vsyncpa [#allocation7], 1 }
 0x4ba   :  { %1138 = vsyncpa [#allocation7 + $0x1], 1 }
 0x4bb   :  { %1139 = vsyncmov [#allocation3] }
 0x4be   :  { %s1140_s17 = vpop.sfrf %1139 }
 0x4bf   :  { %p1275_p5 = scmp.ne.s32.totalorder %s1140_s17, 0 }
 0x4c1   :  { %1144 = shalt.err (%p1275_p5)  }

</bundles_post_ra>
